<compile_context>
chip_gen: v5e
topology: v5e:2x2
jax: 0.10.0
libtpu: 0.0.40
codegen_flags: <defaults>
</compile_context>

<pallas_src>
import functools

import numpy as np

import jax
import jax.numpy as jnp
from jax.experimental import pallas as pl
from jax.experimental.pallas import tpu as pltpu


def _round_up(x: int, m: int) -> int:
    return ((x + m - 1) // m) * m


# ---------------------------------------------------------------------------
# One-time parameter preparation: pack everything into a single VMEM slab.
# ---------------------------------------------------------------------------
def prepare_params(params, param_dtype=jnp.float32):
    """Packs all Linear layers into one (rows, pad) slab.

    Layer block layout (block_rows = pad + 8 rows, all offsets 8-aligned):
      rows [0, pad)      : weight, stored (in_features, out_features), zero padded
      row  pad           : bias
      rows (pad, pad+8)  : zero padding (keeps every block 8-row aligned)

    Trunk (siamese) layers are stored block-diagonally so one matmul serves
    both branches and produces the concatenated activation directly.
    """
    sia_w, sia_b, sh_w, sh_b, w_out, b_out = params
    sia_w = [np.asarray(w, np.float32) for w in sia_w]
    sia_b = [np.asarray(b, np.float32) for b in sia_b]
    sh_w = [np.asarray(w, np.float32) for w in sh_w]
    sh_b = [np.asarray(b, np.float32) for b in sh_b]
    w_out = np.asarray(w_out, np.float32)
    b_out = np.asarray(b_out, np.float32)

    hidden = sia_w[0].shape[0]
    input_dim = sia_w[0].shape[1]

    # One full 128-lane tile covers every layer width here (2*D = 2*H = 64).
    pad = _round_up(max(2 * input_dim, 2 * hidden, 1), 128)
    block_rows = pad + 8

    layer_list = []  # (weight (k, n), bias (n,), relu)
    for w, b in zip(sia_w, sia_b):
        in_f = w.shape[1]
        blk = np.zeros((2 * in_f, 2 * hidden), np.float32)
        blk[:in_f, :hidden] = w.T          # branch 1
        blk[in_f:, hidden:] = w.T          # branch 2 (shared weights)
        layer_list.append((blk, np.concatenate([b, b]), True))
    for w, b in zip(sh_w, sh_b):
        layer_list.append((w.T, b, True))
    layer_list.append((w_out.T, b_out, False))   # final Linear(2H -> 1), no ReLU

    slab = np.zeros((len(layer_list) * block_rows, pad), np.float32)
    meta = []
    for li, (w, b, relu) in enumerate(layer_list):
        off = li * block_rows
        k, n = w.shape
        slab[off:off + k, :n] = w
        slab[off + pad, :n] = b
        # Layer 0 consumes the raw (B, 2*input_dim) input; every later layer
        # consumes the full zero-padded (B, pad) activation.
        k_use = k if li == 0 else pad
        meta.append((int(k_use), bool(relu)))

    return {
        "slab": jnp.asarray(slab, dtype=param_dtype),
        "meta": tuple(meta),
        "pad_width": int(pad),
        "block_rows": int(block_rows),
    }


# ---------------------------------------------------------------------------
# Kernel
# ---------------------------------------------------------------------------
def _make_siamese_kernel(meta, pad_width, block_rows, out_cols, compute_dtype):
    use_f32 = (np.dtype(compute_dtype) == np.dtype(jnp.float32))

    def kernel(x_ref, p_ref, out_ref):
        x = x_ref[...]                                   # (B, 2*D) f32
        # max|x| (XLU reduce + scalar recip) overlaps with the first MXU push;
        # the exact scalar reciprocal is applied in the first epilogue, so the
        # forward /scale and the final *scale still cancel at f32 precision.
        # NOTE: if x could be all zeros, scale==0 -> inf, identical to the
        # PyTorch reference (no guard added on purpose).
        scale = jnp.max(jnp.abs(x))
        inv = 1.0 / scale

        h = x
        off = 0
        for li, (k_rows, relu) in enumerate(meta):
            w = p_ref[off:off + k_rows, :]                       # static slice
            b = p_ref[off + pad_width:off + pad_width + 1, :]    # (1, pad)
            lhs = h if use_f32 else h.astype(compute_dtype)
            acc = jnp.dot(lhs, w, preferred_element_type=jnp.float32)
            if li == 0:
                acc = acc * inv
            acc = acc + b.astype(jnp.float32)
            h = jnp.maximum(acc, 0.0) if relu else acc
            off += block_rows

        # metric != 'cosine' branch of the PyTorch forward: rescale the output.
        out_ref[...] = h[:, :out_cols] * scale

    return kernel


# ---------------------------------------------------------------------------
# Wrapper
# ---------------------------------------------------------------------------
@functools.partial(jax.jit, static_argnames=("meta", "pad_width", "block_rows"))
def siamese_forward(x, slab, *, meta, pad_width, block_rows):
    """x: (B, 2, D) float32.  slab / meta / ...: from prepare_params()."""
    batch, two, input_dim = x.shape
    assert two == 2
    # Free row-major reshape: row b becomes [x[b,0,:] | x[b,1,:]], exactly the
    # lane-concatenated layout the block-diagonal trunk weights expect.
    x2d = x.reshape(batch, 2 * input_dim)

    kernel = _make_siamese_kernel(meta, pad_width, block_rows, 1, slab.dtype)

    flops = 2 * batch * sum(k * pad_width for k, _ in meta)
    bytes_accessed = (x2d.size * x2d.dtype.itemsize
                      + slab.size * slab.dtype.itemsize
                      + batch * 4)

    vmem = pl.BlockSpec(memory_space=pltpu.MemorySpace.VMEM)
    return pl.pallas_call(
        kernel,
        out_shape=jax.ShapeDtypeStruct((batch, 1), jnp.float32),
        in_specs=[vmem, vmem],          # exactly 2 inputs -> 2 prologue DMAs
        out_specs=vmem,
        cost_estimate=pl.CostEstimate(flops=int(flops), transcendentals=0,
                                      bytes_accessed=int(bytes_accessed)),
        # Footprint today is a few hundred KiB; declare the budget explicitly
        # so a scaled-up config fails loudly (v7x scoped default is 32 MiB).
        compiler_params=pltpu.CompilerParams(vmem_limit_bytes=32 * 1024 * 1024),
    )(x2d, slab)


# ---------------------------------------------------------------------------
# Synthetic parameters + pure-JAX reference (mirrors the PyTorch module)
# ---------------------------------------------------------------------------
def init_params(key, input_dim, hidden_dim, num_siamese_layers, num_shared_layers):
    """Deterministic synthetic parameters with torch.nn.Linear shapes."""
    def linear(k, in_f, out_f):
        kw, kb = jax.random.split(k)
        bound = 1.0 / jnp.sqrt(jnp.float32(in_f))
        w = jax.random.uniform(kw, (out_f, in_f), jnp.float32, -bound, bound)
        b = jax.random.uniform(kb, (out_f,), jnp.float32, -bound, bound)
        return w, b

    keys = jax.random.split(key, num_siamese_layers + num_shared_layers + 1)
    ki = 0
    sia_w, sia_b = [], []
    for i in range(num_siamese_layers):
        in_f = input_dim if i == 0 else hidden_dim
        w, b = linear(keys[ki], in_f, hidden_dim); ki += 1
        sia_w.append(w); sia_b.append(b)
    sh_w, sh_b = [], []
    for _ in range(num_shared_layers):
        w, b = linear(keys[ki], 2 * hidden_dim, 2 * hidden_dim); ki += 1
        sh_w.append(w); sh_b.append(b)
    w_out, b_out = linear(keys[ki], 2 * hidden_dim, 1)
    return sia_w, sia_b, sh_w, sh_b, w_out, b_out


def reference_forward(x, params):
    """Pure-JAX reference mirroring the PyTorch forward (true-f32 matmuls)."""
    sia_w, sia_b, sh_w, sh_b, w_out, b_out = params
    pr = jax.lax.Precision.HIGHEST
    scale = jnp.max(jnp.abs(x))
    xs = x / scale
    x1, x2 = xs[:, 0, :], xs[:, 1, :]
    for w, b in zip(sia_w, sia_b):
        x1 = jax.nn.relu(jnp.dot(x1, w.T, precision=pr) + b)
        x2 = jax.nn.relu(jnp.dot(x2, w.T, precision=pr) + b)
    h = jnp.concatenate([x1, x2], axis=1)
    for w, b in zip(sh_w, sh_b):
        h = jax.nn.relu(jnp.dot(h, w.T, precision=pr) + b)
    out = jnp.dot(h, w_out.T, precision=pr) + b_out
    return out * scale


if __name__ == "__main__":
    INPUT_DIM = 32
    HIDDEN_DIM = 32
    NUM_SIAMESE_LAYERS = 2
    NUM_SHARED_LAYERS = 2
    BATCH = 8

    key = jax.random.PRNGKey(0)
    kx, kp = jax.random.split(key)
    x = jax.random.normal(kx, (BATCH, 2, INPUT_DIM), jnp.float32)
    params = init_params(kp, INPUT_DIM, HIDDEN_DIM,
                         NUM_SIAMESE_LAYERS, NUM_SHARED_LAYERS)

    ref = jax.block_until_ready(reference_forward(x, params))

    # --- f32 parameter slab: strict numerical check -------------------------
    prep = prepare_params(params, param_dtype=jnp.float32)
    out = jax.block_until_ready(
        siamese_forward(x, prep["slab"], meta=prep["meta"],
                        pad_width=prep["pad_width"],
                        block_rows=prep["block_rows"]))
    assert out.shape == (BATCH, 1), out.shape
    assert jnp.allclose(out, ref, atol=1e-4, rtol=1e-4), (out, ref)

    # --- bf16 parameter slab (single-pass MXU on v6e/v7x), f32 epilogues ----
    prep16 = prepare_params(params, param_dtype=jnp.bfloat16)
    out16 = jax.block_until_ready(
        siamese_forward(x, prep16["slab"], meta=prep16["meta"],
                        pad_width=prep16["pad_width"],
                        block_rows=prep16["block_rows"]))
    rel_err = jnp.max(jnp.abs(out16 - ref)) / (jnp.max(jnp.abs(ref)) + 1e-6)
    assert out16.shape == (BATCH, 1) and bool(rel_err < 5e-2), rel_err

    print("KERNEL_OK")
</pallas_src>

<mosaic_0001>
module attributes {stable_mosaic.version = 11 : i64} {
  func.func @kernel(%arg0: memref<8x64xf32, #tpu.memory_space<vmem>>, %arg1: memref<680x128xf32, #tpu.memory_space<vmem>>, %arg2: memref<8x1xf32, #tpu.memory_space<vmem>>) attributes {dimension_semantics = [], scalar_prefetch = 0 : i64, scratch_operands = 0 : i64, tpu.core_type = #tpu.core_type<tc>} {
    %c0 = arith.constant 0 : index
    %c0_0 = arith.constant 0 : index
    %0 = vector.load %arg0[%c0, %c0_0] : memref<8x64xf32, #tpu.memory_space<vmem>>, vector<8x64xf32>
    %1 = math.absf %0 : vector<8x64xf32>
    %2 = vector.shape_cast %1 : vector<8x64xf32> to vector<1x8x64xf32>
    %cst = arith.constant dense<0xFF800000> : vector<1xf32>
    %3 = vector.multi_reduction <maximumf>, %2, %cst [1, 2] : vector<1x8x64xf32> to vector<1xf32>
    %4 = vector.shape_cast %3 : vector<1xf32> to vector<1x1x1xf32>
    %5 = vector.extract %4[0, 0, 0] : f32 from vector<1x1x1xf32>
    %cst_1 = arith.constant 1.000000e+00 : f32
    %6 = arith.divf %cst_1, %5 : f32
    %c0_2 = arith.constant 0 : index
    %c0_3 = arith.constant 0 : index
    %7 = vector.load %arg1[%c0_2, %c0_3] : memref<680x128xf32, #tpu.memory_space<vmem>>, vector<64x128xf32>
    %c128 = arith.constant 128 : index
    %c0_4 = arith.constant 0 : index
    %8 = vector.load %arg1[%c128, %c0_4] : memref<680x128xf32, #tpu.memory_space<vmem>>, vector<1x128xf32>
    %cst_5 = arith.constant dense<0.000000e+00> : vector<8x128xf32>
    %9 = tpu.matmul %0, %7, %cst_5 {dimension_numbers = #tpu.dot_dimension_numbers<[1], [0], [0], [1], [0, 0, 1, 1], [], []>} : vector<8x64xf32>, vector<64x128xf32>, vector<8x128xf32> -> vector<8x128xf32>
    %10 = vector.broadcast %6 : f32 to vector<8x128xf32>
    %11 = arith.mulf %9, %10 : vector<8x128xf32>
    %12 = vector.broadcast %8 : vector<1x128xf32> to vector<8x128xf32>
    %13 = arith.addf %11, %12 : vector<8x128xf32>
    %cst_6 = arith.constant 0.000000e+00 : f32
    %14 = vector.broadcast %cst_6 : f32 to vector<8x128xf32>
    %15 = arith.maximumf %13, %14 : vector<8x128xf32>
    %c136 = arith.constant 136 : index
    %c0_7 = arith.constant 0 : index
    %16 = vector.load %arg1[%c136, %c0_7] : memref<680x128xf32, #tpu.memory_space<vmem>>, vector<128x128xf32>
    %c264 = arith.constant 264 : index
    %c0_8 = arith.constant 0 : index
    %17 = vector.load %arg1[%c264, %c0_8] : memref<680x128xf32, #tpu.memory_space<vmem>>, vector<1x128xf32>
    %cst_9 = arith.constant dense<0.000000e+00> : vector<8x128xf32>
    %18 = tpu.matmul %15, %16, %cst_9 {dimension_numbers = #tpu.dot_dimension_numbers<[1], [0], [0], [1], [0, 0, 1, 1], [], []>} : vector<8x128xf32>, vector<128x128xf32>, vector<8x128xf32> -> vector<8x128xf32>
    %19 = vector.broadcast %17 : vector<1x128xf32> to vector<8x128xf32>
    %20 = arith.addf %18, %19 : vector<8x128xf32>
    %cst_10 = arith.constant 0.000000e+00 : f32
    %21 = vector.broadcast %cst_10 : f32 to vector<8x128xf32>
    %22 = arith.maximumf %20, %21 : vector<8x128xf32>
    %c272 = arith.constant 272 : index
    %c0_11 = arith.constant 0 : index
    %23 = vector.load %arg1[%c272, %c0_11] : memref<680x128xf32, #tpu.memory_space<vmem>>, vector<128x128xf32>
    %c400 = arith.constant 400 : index
    %c0_12 = arith.constant 0 : index
    %24 = vector.load %arg1[%c400, %c0_12] : memref<680x128xf32, #tpu.memory_space<vmem>>, vector<1x128xf32>
    %cst_13 = arith.constant dense<0.000000e+00> : vector<8x128xf32>
    %25 = tpu.matmul %22, %23, %cst_13 {dimension_numbers = #tpu.dot_dimension_numbers<[1], [0], [0], [1], [0, 0, 1, 1], [], []>} : vector<8x128xf32>, vector<128x128xf32>, vector<8x128xf32> -> vector<8x128xf32>
    %26 = vector.broadcast %24 : vector<1x128xf32> to vector<8x128xf32>
    %27 = arith.addf %25, %26 : vector<8x128xf32>
    %cst_14 = arith.constant 0.000000e+00 : f32
    %28 = vector.broadcast %cst_14 : f32 to vector<8x128xf32>
    %29 = arith.maximumf %27, %28 : vector<8x128xf32>
    %c408 = arith.constant 408 : index
    %c0_15 = arith.constant 0 : index
    %30 = vector.load %arg1[%c408, %c0_15] : memref<680x128xf32, #tpu.memory_space<vmem>>, vector<128x128xf32>
    %c536 = arith.constant 536 : index
    %c0_16 = arith.constant 0 : index
    %31 = vector.load %arg1[%c536, %c0_16] : memref<680x128xf32, #tpu.memory_space<vmem>>, vector<1x128xf32>
    %cst_17 = arith.constant dense<0.000000e+00> : vector<8x128xf32>
    %32 = tpu.matmul %29, %30, %cst_17 {dimension_numbers = #tpu.dot_dimension_numbers<[1], [0], [0], [1], [0, 0, 1, 1], [], []>} : vector<8x128xf32>, vector<128x128xf32>, vector<8x128xf32> -> vector<8x128xf32>
    %33 = vector.broadcast %31 : vector<1x128xf32> to vector<8x128xf32>
    %34 = arith.addf %32, %33 : vector<8x128xf32>
    %cst_18 = arith.constant 0.000000e+00 : f32
    %35 = vector.broadcast %cst_18 : f32 to vector<8x128xf32>
    %36 = arith.maximumf %34, %35 : vector<8x128xf32>
    %c544 = arith.constant 544 : index
    %c0_19 = arith.constant 0 : index
    %37 = vector.load %arg1[%c544, %c0_19] : memref<680x128xf32, #tpu.memory_space<vmem>>, vector<128x128xf32>
    %c672 = arith.constant 672 : index
    %c0_20 = arith.constant 0 : index
    %38 = vector.load %arg1[%c672, %c0_20] : memref<680x128xf32, #tpu.memory_space<vmem>>, vector<1x128xf32>
    %cst_21 = arith.constant dense<0.000000e+00> : vector<8x128xf32>
    %39 = tpu.matmul %36, %37, %cst_21 {dimension_numbers = #tpu.dot_dimension_numbers<[1], [0], [0], [1], [0, 0, 1, 1], [], []>} : vector<8x128xf32>, vector<128x128xf32>, vector<8x128xf32> -> vector<8x128xf32>
    %40 = vector.broadcast %38 : vector<1x128xf32> to vector<8x128xf32>
    %41 = arith.addf %39, %40 : vector<8x128xf32>
    %42 = vector.extract_strided_slice %41 {offsets = [0, 0], sizes = [8, 1], strides = [1, 1]} : vector<8x128xf32> to vector<8x1xf32>
    %43 = vector.broadcast %5 : f32 to vector<8x1xf32>
    %44 = arith.mulf %42, %43 : vector<8x1xf32>
    %c0_22 = arith.constant 0 : index
    %c0_23 = arith.constant 0 : index
    %45 = vector.load %arg2[%c0_22, %c0_23] : memref<8x1xf32, #tpu.memory_space<vmem>>, vector<8x1xf32>
    tpu.vector_store %arg2[%c0_22, %c0_23], %44 {strides = array<i32>} : memref<8x1xf32, #tpu.memory_space<vmem>>, vector<8x1xf32>,
    return
  }
}

</mosaic_0001>

<bundles_post_ra>
// kernel: siamese_forward.1
= control target key start
LH: loop header
LB: loop body
LE: loop exit
PB: predicated region body
PF: predicated region fallthrough
CT: control target
= control target key end

     0   :  { %7 = vsyncpa [#allocation3], 0  ;;  %s298_s12 = smov [#allocation2]   ;;  %s299_s14 = smov 128   ;;  %s335_s0 = inlined_call_operand.vmem [shape: f32[8,64], index: 0, kind: input, shape index: {}]   ;;  %s336_s1 = inlined_call_operand.hbm [shape: f32[680,128], index: 1, kind: input, shape index: {}]   ;;  %s337_s2 = inlined_call_operand.vmem [shape: f32[8,1], index: 2, kind: output, shape index: {}]  }
   0x1   :  { %s14_s11 = sshll.u32 %s336_s1, 4  ;;  %s16_s13 = sshll.u32 %s298_s12, 4  ;;  %s15_s11 = int_to_ptr.hbm [resolvable:$true] %s14_s11  ;;  %s17_s13 = int_to_ptr.vmem [resolvable:$true] %s16_s13 }
   0x2   :  { %s300_s15 = smov 8  }
   0x3   :  { %22 = dma.hbm_to_vmem [thread:$0]  %s15_s11, 10880, %s17_s13, [#allocation3], %s299_s14, %s299_s14, %s300_s15  }
   0x4   :  { %296 = dma.done.wait [#allocation3], 10880  }
   0x5   :  { %297 = vsyncadd [#allocation3], 4294956416  ;;  %v27_v0 = vld [vmem:[%s335_s0] sm:$0xff]  ;;  %vm29_vm0 = vcmask 523264   ;;  %v63_v1 = vld [vmem:[#allocation2 + $0x38] sm:$0xff]  ;;  %vm250_vm5 = vcmask 7168  }
   0x6   :  { %v62_v2 = vld [vmem:[#allocation2 + $0x30] sm:$0xff]  ;;  %v28_v3 = vand.u32 2147483647, %v27_v0  ;;  %76 = vmatpush.msra.mxu0 %v63_v1  ;;  %v61_v4 = vld [vmem:[#allocation2 + $0x28] sm:$0xff]  ;;  %v60_v6 = vld [vmem:[#allocation2 + $0x20] sm:$0xff] }
   0x7   :  { %v59_v7 = vld [vmem:[#allocation2 + $0x18] sm:$0xff]  ;;  %v58_v8 = vld [vmem:[#allocation2 + $0x10] sm:$0xff]  ;;  %v57_v9 = vld [vmem:[#allocation2 + $0x8] sm:$0xff] }
   0x8   :  { %v30_v5 = vsel %vm29_vm0, %v28_v3, -inf  ;;  %77 = vmatpush.msra.mxu0 %v62_v2  ;;  %v56_v10 = vld [vmem:[#allocation2] sm:$0xff]  ;;  %v107_v19 = vld [vmem:[#allocation2 + $0xf8] sm:$0xff]  ;;  %v106_v20 = vld [vmem:[#allocation2 + $0xf0] sm:$0xff] }
   0x9   :  { %31 = vmax.xlane.f32.xlu0 %v30_v5  ;;  %v108_v18 = vld [vmem:[#allocation2 + $0x100] sm:$0xff]  ;;  %v105_v21 = vld [vmem:[#allocation2 + $0xe8] sm:$0xff]  ;;  %v103_v23 = vld [vmem:[#allocation2 + $0xd8] sm:$0xff] }
   0xa   :  { %78 = vmatpush.msra.mxu0 %v61_v4  ;;  %111 = vmatpush.msra.mxu1 %v108_v18  ;;  %v104_v22 = vld [vmem:[#allocation2 + $0xe0] sm:$0xff]  ;;  %v102_v24 = vld [vmem:[#allocation2 + $0xd0] sm:$0xff]  ;;  %v101_v25 = vld [vmem:[#allocation2 + $0xc8] sm:$0xff] }
   0xb   :  { %v100_v27 = vld [vmem:[#allocation2 + $0xc0] sm:$0xff]  ;;  %v99_v28 = vld [vmem:[#allocation2 + $0xb8] sm:$0xff]  ;;  %v98_v29 = vld [vmem:[#allocation2 + $0xb0] sm:$0xff] }
   0xc   :  { %79 = vmatpush.msra.mxu0 %v60_v6  ;;  %112 = vmatpush.msra.mxu1 %v107_v19  ;;  %v97_v30 = vld [vmem:[#allocation2 + $0xa8] sm:$0xff]  ;;  %v96_v41 = vld [vmem:[#allocation2 + $0xa0] sm:$0xff]  ;;  %v95_v42 = vld [vmem:[#allocation2 + $0x98] sm:$0xff] }
   0xd   :  { %v94_v43 = vld [vmem:[#allocation2 + $0x90] sm:$0xff]  ;;  %v93_v44 = vld [vmem:[#allocation2 + $0x88] sm:$0xff]  ;;  %v146_v46 = vld [vmem:[#allocation2 + $0x180] sm:$0xff] }
   0xe   :  { %80 = vmatpush.msra.mxu0 %v59_v7  ;;  %113 = vmatpush.msra.mxu1 %v106_v20  ;;  %v147_v45 = vld [vmem:[#allocation2 + $0x188] sm:$0xff]  ;;  %v145_v47 = vld [vmem:[#allocation2 + $0x178] sm:$0xff]  ;;  %v144_v48 = vld [vmem:[#allocation2 + $0x170] sm:$0xff] }
   0xf   :  { %150 = vmatpush.msra.mxu2 %v147_v45  ;;  %v143_v49 = vld [vmem:[#allocation2 + $0x168] sm:$0xff]  ;;  %v142_v50 = vld [vmem:[#allocation2 + $0x160] sm:$0xff]  ;;  %v141_v51 = vld [vmem:[#allocation2 + $0x158] sm:$0xff] }
  0x10   :  { %81 = vmatpush.msra.mxu0 %v58_v8  ;;  %114 = vmatpush.msra.mxu1 %v105_v21  ;;  %v140_v52 = vld [vmem:[#allocation2 + $0x150] sm:$0xff]  ;;  %v139_v53 = vld [vmem:[#allocation2 + $0x148] sm:$0xff]  ;;  %v138_v54 = vld [vmem:[#allocation2 + $0x140] sm:$0xff] }
  0x11   :  { %151 = vmatpush.msra.mxu2 %v146_v46  ;;  %v137_v55 = vld [vmem:[#allocation2 + $0x138] sm:$0xff]  ;;  %v136_v56 = vld [vmem:[#allocation2 + $0x130] sm:$0xff]  ;;  %v135_v57 = vld [vmem:[#allocation2 + $0x128] sm:$0xff] }
  0x12   :  { %82 = vmatpush.msra.mxu0 %v57_v9  ;;  %115 = vmatpush.msra.mxu1 %v104_v22  ;;  %v265_v59 = vld [vmem:[#allocation2 + $0x80] ss:$0 sm:$0xff]  ;;  %v133_v1 = vld [vmem:[#allocation2 + $0x118] sm:$0xff]  ;;  %v132_v2 = vld [vmem:[#allocation2 + $0x110] sm:$0xff] }
  0x13   :  { %152 = vmatpush.msra.mxu2 %v145_v47  ;;  %v186_v3 = vld [vmem:[#allocation2 + $0x210] sm:$0xff]  ;;  %v185_v4 = vld [vmem:[#allocation2 + $0x208] sm:$0xff]  ;;  %v184_v5 = vld [vmem:[#allocation2 + $0x200] sm:$0xff] }
  0x14   :  { %83 = vmatpush.msra.mxu0 %v56_v10  ;;  %116 = vmatpush.msra.mxu1 %v103_v23  ;;  %v183_v6 = vld [vmem:[#allocation2 + $0x1f8] sm:$0xff]  ;;  %v182_v7 = vld [vmem:[#allocation2 + $0x1f0] sm:$0xff]  ;;  %v181_v8 = vld [vmem:[#allocation2 + $0x1e8] sm:$0xff] }
  0x15   :  { %257 = vmatmul.msk.f32.vlgmr.msra.gmra.mxu0 %vm29_vm0, %v27_v0  ;;  %153 = vmatpush.msra.mxu2 %v144_v48  ;;  %v134_v0 = vld [vmem:[#allocation2 + $0x120] sm:$0xff]  ;;  %v179_v10 = vld [vmem:[#allocation2 + $0x1d8] sm:$0xff]  ;;  %v173_v20 = vld [vmem:[#allocation2 + $0x1a8] sm:$0xff] }
  0x16   :  { %117 = vmatpush.msra.mxu1 %v102_v24  ;;  %189 = vmatpush.msra.mxu3 %v186_v3  ;;  %v180_v9 = vld [vmem:[#allocation2 + $0x1e0] sm:$0xff]  ;;  %v171_v22 = vld [vmem:[#allocation2 + $0x198] sm:$0xff]  ;;  %v224_v24 = vld [vmem:[#allocation2 + $0x290] sm:$0xff] }
  0x17   :  { %154 = vmatpush.msra.mxu2 %v143_v49  ;;  %v172_v21 = vld [vmem:[#allocation2 + $0x1a0] sm:$0xff]  ;;  %v225_v23 = vld [vmem:[#allocation2 + $0x298] sm:$0xff] }
  0x18   :  { %118 = vmatpush.msra.mxu1 %v101_v25  ;;  %190 = vmatpush.msra.mxu3 %v185_v4  ;;  %v223_v25 = vld [vmem:[#allocation2 + $0x288] sm:$0xff]  ;;  %v269_v48 = vld [vmem:[#allocation2 + $0x2a0] ss:$0 sm:$0xff] }
  0x19   :  { %155 = vmatpush.msra.mxu2 %v142_v50  ;;  %228 = vmatpush.msrb.mxu0 %v225_v23 }
  0x1a   :  { %119 = vmatpush.msra.mxu1 %v100_v27  ;;  %191 = vmatpush.msra.mxu3 %v184_v5  ;;  %v222_v27 = vld [vmem:[#allocation2 + $0x280] sm:$0xff] }
  0x1b   :  { %156 = vmatpush.msra.mxu2 %v141_v51  ;;  %229 = vmatpush.msrb.mxu0 %v224_v24 }
  0x1c   :  { %120 = vmatpush.msra.mxu1 %v99_v28  ;;  %192 = vmatpush.msra.mxu3 %v183_v6  ;;  %v221_v28 = vld [vmem:[#allocation2 + $0x278] sm:$0xff] }
  0x1d   :  { %157 = vmatpush.msra.mxu2 %v140_v52  ;;  %230 = vmatpush.msrb.mxu0 %v223_v25 }
  0x1e   :  { %121 = vmatpush.msra.mxu1 %v98_v29  ;;  %193 = vmatpush.msra.mxu3 %v182_v7  ;;  %v220_v29 = vld [vmem:[#allocation2 + $0x270] sm:$0xff] }
  0x1f   :  { %158 = vmatpush.msra.mxu2 %v139_v53  ;;  %231 = vmatpush.msrb.mxu0 %v222_v27 }
  0x20   :  { %122 = vmatpush.msra.mxu1 %v97_v30  ;;  %194 = vmatpush.msra.mxu3 %v181_v8  ;;  %v219_v30 = vld [vmem:[#allocation2 + $0x268] sm:$0xff] }
  0x21   :  { %159 = vmatpush.msra.mxu2 %v138_v54  ;;  %232 = vmatpush.msrb.mxu0 %v221_v28 }
  0x22   :  { %123 = vmatpush.msra.mxu1 %v96_v41  ;;  %195 = vmatpush.msra.mxu3 %v180_v9  ;;  %v212_v41 = vld [vmem:[#allocation2 + $0x230] sm:$0xff] }
  0x23   :  { %160 = vmatpush.msra.mxu2 %v137_v55  ;;  %233 = vmatpush.msrb.mxu0 %v220_v29 }
  0x24   :  { %124 = vmatpush.msra.mxu1 %v95_v42  ;;  %196 = vmatpush.msra.mxu3 %v179_v10  ;;  %v211_v42 = vld [vmem:[#allocation2 + $0x228] sm:$0xff] }
  0x25   :  { %161 = vmatpush.msra.mxu2 %v136_v56  ;;  %234 = vmatpush.msrb.mxu0 %v219_v30 }
  0x26   :  { %125 = vmatpush.msra.mxu1 %v94_v43  ;;  %v210_v43 = vld [vmem:[#allocation2 + $0x220] sm:$0xff] }
  0x27   :  { %162 = vmatpush.msra.mxu2 %v135_v57 }
  0x28   :  { %126 = vmatpush.msra.mxu1 %v93_v44  ;;  %v268_v44 = vld [vmem:[#allocation2 + $0x218] ss:$0 sm:$0xff] }
  0x29   :  { %163 = vmatpush.msra.mxu2 %v134_v0 }
  0x2b   :  { %164 = vmatpush.msra.mxu2 %v133_v1 }
  0x2d   :  { %165 = vmatpush.msra.mxu2 %v132_v2 }
  0x7c   :  { %v32_v11 = vpop.xlane.xlu0 %31 }
  0x7d   :  { %v33_v12 = vrot.slane %v32_v11, 4 }
  0x7f   :  { %v34_v13 = vmax.f32 %v32_v11, %v33_v12  ;;  %v178_v11 = vld [vmem:[#allocation2 + $0x1d0] sm:$0xff]  ;;  %v177_v12 = vld [vmem:[#allocation2 + $0x1c8] sm:$0xff] }
  0x80   :  { %197 = vmatpush.msra.mxu3 %v178_v11 }
  0x81   :  { %v35_v14 = vrot.slane %v34_v13, 2 }
  0x82   :  { %198 = vmatpush.msra.mxu3 %v177_v12 }
  0x83   :  { %v36_v15 = vmax.f32 %v34_v13, %v35_v14  ;;  %v176_v13 = vld [vmem:[#allocation2 + $0x1c0] sm:$0xff]  ;;  %v175_v14 = vld [vmem:[#allocation2 + $0x1b8] sm:$0xff] }
  0x84   :  { %199 = vmatpush.msra.mxu3 %v176_v13 }
  0x85   :  { %v37_v16 = vrot.slane %v36_v15, 1 }
  0x86   :  { %200 = vmatpush.msra.mxu3 %v175_v14 }
  0x87   :  { %v38_v17 = vmax.f32 %v36_v15, %v37_v16  ;;  %v174_v15 = vld [vmem:[#allocation2 + $0x1b0] sm:$0xff]  ;;  %v266_v16 = vld [vmem:[#allocation2 + $0x108] ss:$0 sm:$0xff] }
  0x88   :  { %201 = vmatpush.msra.mxu3 %v174_v15 }
  0x89   :  { %258 = vpush %v38_v17 }
  0x8a   :  { %202 = vmatpush.msra.mxu3 %v173_v20 }
  0x8c   :  { %203 = vmatpush.msra.mxu3 %v172_v21 }
  0x8e   :  { %204 = vmatpush.msra.mxu3 %v171_v22 }
  0x92   :  { %v85_v58 = vpop.f32.mrf.mxu0 }
  0xba   :  { %s259_s0 = spop %258 }
  0xbb   :  { %v324_v26 = vstv %s259_s0 }
  0xbc   :  { %270 = vrcp.f32 %v324_v26  ;;  %v52_v34 = vand.u32 2147483648, %v324_v26  ;;  %v50_v36 = vand.u32 2147483647, %v324_v26  ;;  %vm46_vm2 = vweird.f32 %v324_v26 }
  0xbe   :  { %v53_v38 = vor.u32 1.1754944e-38, %v52_v34  ;;  %vm51_vm4 = vcmp.eq.f32.partialorder %v50_v36, 8.507059e+37  ;;  %v215_v34 = vld [vmem:[#allocation2 + $0x248] sm:$0xff]  ;;  %v213_v36 = vld [vmem:[#allocation2 + $0x238] sm:$0xff] }
  0xc2   :  { %v271_v31 = vpop.eup %270 }
  0xc3   :  { %v42_v32 = vmul.f32 %v271_v31, %v324_v26  ;;  %vm47_vm1 = vweird.f32 %v271_v31 }
  0xc4   :  { %vm48_vm3 = vmor %vm46_vm2, %vm47_vm1 }
  0xc5   :  { %v43_v33 = vsub.f32 1.0, %v42_v32  ;;  %v217_v32 = vld [vmem:[#allocation2 + $0x258] sm:$0xff] }
  0xc7   :  { %v44_v35 = vmul.f32 %v271_v31, %v43_v33  ;;  %v216_v33 = vld [vmem:[#allocation2 + $0x250] sm:$0xff] }
  0xc9   :  { %v45_v37 = vadd.f32 %v271_v31, %v44_v35  ;;  %v214_v35 = vld [vmem:[#allocation2 + $0x240] sm:$0xff] }
  0xcb   :  { %v49_v39 = vsel %vm48_vm3, %v271_v31, %v45_v37  ;;  %v218_v31 = vld [vmem:[#allocation2 + $0x260] sm:$0xff]  ;;  %v267_v37 = vld [vmem:[#allocation2 + $0x190] ss:$0 sm:$0xff] }
  0xcc   :  { %v54_v40 = vsel %vm51_vm4, %v53_v38, %v49_v39  ;;  %235 = vmatpush.msrb.mxu0 %v218_v31 }
  0xcd   :  { %260 = vpush %v54_v40 }
  0xce   :  { %236 = vmatpush.msrb.mxu0 %v217_v32 }
  0xd0   :  { %237 = vmatpush.msrb.mxu0 %v216_v33 }
  0xd2   :  { %238 = vmatpush.msrb.mxu0 %v215_v34 }
  0xd4   :  { %239 = vmatpush.msrb.mxu0 %v214_v35 }
  0xd6   :  { %240 = vmatpush.msrb.mxu0 %v213_v36 }
  0xd8   :  { %241 = vmatpush.msrb.mxu0 %v212_v41 }
  0xda   :  { %242 = vmatpush.msrb.mxu0 %v211_v42 }
  0xdc   :  { %243 = vmatpush.msrb.mxu0 %v210_v43 }
  0xfe   :  { %s261_s1 = spop %260 }
  0xff   :  { %v88_v60 = vstv %s261_s1 }
 0x100   :  { %v89_v61 = vmul.f32 %v88_v60, %v85_v58 }
 0x102   :  { %v91_v62 = vadd.f32 %v265_v59, %v89_v61 }
 0x104   :  { %v92_v63 = vmax.f32 %v91_v62, 0.0 }
 0x106   :  { %127 = vmatmul.f32.vlgmr.msra.gmra.mxu1 %v92_v63 }
 0x183   :  { %v128_v17 = vpop.f32.mrf.mxu1 }
 0x184   :  { %v129_v18 = vadd.f32 %v266_v16, %v128_v17 }
 0x186   :  { %v131_v19 = vmax.f32 %v129_v18, 0.0 }
 0x188   :  { %166 = vmatmul.f32.vlgmr.msra.gmra.mxu2 %v131_v19 }
 0x20b   :  { %v167_v38 = vpop.f32.mrf.mxu2 }
 0x20c   :  { %v168_v39 = vadd.f32 %v267_v37, %v167_v38 }
 0x20e   :  { %v170_v40 = vmax.f32 %v168_v39, 0.0 }
 0x210   :  { %205 = vmatmul.f32.vlgmr.msra.gmra.mxu3 %v170_v40 }
 0x293   :  { %v206_v45 = vpop.f32.mrf.mxu3 }
 0x294   :  { %v207_v46 = vadd.f32 %v268_v44, %v206_v45 }
 0x296   :  { %v209_v47 = vmax.f32 %v207_v46, 0.0 }
 0x298   :  { %244 = vmatmul.f32.vlgmr.msrb.gmra.mxu0 %v209_v47 }
 0x315   :  { %v245_v49 = vpop.f32.mrf.mxu0 }
 0x316   :  { %v246_v50 = vadd.f32 %v269_v48, %v245_v49 }
 0x318   :  { %v249_v51 = vmul.f32 %v246_v50, %v324_v26 }
 0x31a   :  { %251 = vst.msk [vmem:[%s337_s2] sm:$0xff] %vm250_vm5, %v249_v51 }
 0x31b   :  { %256 = vsyncpa [#allocation3], 1 }

</bundles_post_ra>
